<compile_context>
chip_gen: v6e
topology: v6e:2x2x1
jax: 0.10.0
libtpu: 0.0.40
codegen_flags: <defaults>
</compile_context>

<pallas_src>
import jax
import jax.numpy as jnp
from jax.experimental import pallas as pl
from jax.experimental.pallas import tpu as pltpu

TB = 128  # batch rows processed per grid step


def _fm_kernel(uid_ref, cid_ref, ut_ref, ct_ref, wu_ref, wc_ref, b_ref, o_ref):
    # uid_ref / cid_ref : (1, TB) int32 ids for this batch tile (VMEM)
    # ut_ref            : (D, NU) user embedding table, transposed (VMEM, resident)
    # ct_ref            : (D, NC) course embedding table, transposed (VMEM, resident)
    # wu_ref / wc_ref   : (1, D)  user/course halves of the linear weight
    # b_ref             : (1,)    bias scalar in SMEM
    # o_ref             : (1, TB) lane-dense output block
    nu = ut_ref.shape[1]
    nc = ct_ref.shape[1]
    tb = uid_ref.shape[-1]

    uid = uid_ref[...]                                                 # (1, TB)
    cid = cid_ref[...]                                                 # (1, TB)

    # One-hot "gather" on the MXU: oh[u, r] = (ids[r] == u). Exact for 0/1.
    oh_u = (jax.lax.broadcasted_iota(jnp.int32, (nu, tb), 0) == uid
            ).astype(jnp.float32)                                      # (NU, TB)
    oh_c = (jax.lax.broadcasted_iota(jnp.int32, (nc, tb), 0) == cid
            ).astype(jnp.float32)                                      # (NC, TB)

    u_emb_t = jnp.dot(ut_ref[...], oh_u,
                      preferred_element_type=jnp.float32)              # (D, TB)
    c_emb_t = jnp.dot(ct_ref[...], oh_c,
                      preferred_element_type=jnp.float32)              # (D, TB)

    # cat([u, c], -1) @ W^T  ==  w_user @ u^T + w_course @ c^T
    y = (jnp.dot(wu_ref[...], u_emb_t, preferred_element_type=jnp.float32)
         + jnp.dot(wc_ref[...], c_emb_t, preferred_element_type=jnp.float32)
         + b_ref[0])                                                   # (1, TB)
    o_ref[...] = y


def quantized_fm_forward(user_ids, course_ids, user_table, course_table, w, b):
    """user_ids/course_ids: int (B,).  Returns float32 (B, 1)."""
    B = user_ids.shape[0]
    num_users, D = user_table.shape
    num_courses = course_table.shape[0]

    num_tiles = pl.cdiv(B, TB)
    Bp = num_tiles * TB

    # Pad ids with 0 (always a valid row); padded outputs are sliced off below.
    uid = jnp.pad(user_ids.astype(jnp.int32), (0, Bp - B)).reshape(num_tiles, TB)
    cid = jnp.pad(course_ids.astype(jnp.int32), (0, Bp - B)).reshape(num_tiles, TB)

    # Wrapper-side layout plumbing (free): transpose tables, split the weight.
    ut_t = user_table.astype(jnp.float32).T        # (D, NU)
    ct_t = course_table.astype(jnp.float32).T      # (D, NC)
    w_u = w[:, :D].astype(jnp.float32)             # (1, D)
    w_c = w[:, D:].astype(jnp.float32)             # (1, D)
    b1 = b.reshape(1).astype(jnp.float32)          # (1,)

    out = pl.pallas_call(
        _fm_kernel,
        grid=(num_tiles,),
        in_specs=[
            pl.BlockSpec((1, TB), lambda i: (i, 0)),                 # user ids
            pl.BlockSpec((1, TB), lambda i: (i, 0)),                 # course ids
            pl.BlockSpec((D, num_users), lambda i: (0, 0)),          # user table^T
            pl.BlockSpec((D, num_courses), lambda i: (0, 0)),        # course table^T
            pl.BlockSpec((1, D), lambda i: (0, 0)),                  # w_user
            pl.BlockSpec((1, D), lambda i: (0, 0)),                  # w_course
            pl.BlockSpec(memory_space=pltpu.MemorySpace.SMEM),       # bias
        ],
        out_specs=pl.BlockSpec((1, TB), lambda i: (i, 0)),
        out_shape=jax.ShapeDtypeStruct((num_tiles, TB), jnp.float32),
        compiler_params=pltpu.CompilerParams(
            dimension_semantics=("parallel",)),
    )(uid, cid, ut_t, ct_t, w_u, w_c, b1)

    return out.reshape(Bp)[:B].reshape(B, 1)


def reference_forward(user_ids, course_ids, user_table, course_table, w, b):
    ue = user_table[user_ids]                       # (B, D)
    ce = course_table[course_ids]                   # (B, D)
    x = jnp.concatenate([ue, ce], axis=1)           # (B, 2D)
    return x @ w.T + b                              # (B, 1)


if __name__ == "__main__":
    num_users, num_courses, embedding_dim = 64, 32, 32
    batch = 8

    key = jax.random.PRNGKey(0)
    k_u, k_c, k_w, k_b, k_uid, k_cid = jax.random.split(key, 6)

    # Deterministic synthetic parameters (shapes match the nn.Module __init__).
    user_table = jax.random.normal(k_u, (num_users, embedding_dim), jnp.float32)
    course_table = jax.random.normal(k_c, (num_courses, embedding_dim), jnp.float32)
    bound = 1.0 / jnp.sqrt(2.0 * embedding_dim)
    w = jax.random.uniform(k_w, (1, 2 * embedding_dim), jnp.float32, -bound, bound)
    b = jax.random.uniform(k_b, (1,), jnp.float32, -bound, bound)

    user_ids = jax.random.randint(k_uid, (batch,), 0, num_users, jnp.int32)
    course_ids = jax.random.randint(k_cid, (batch,), 0, num_courses, jnp.int32)

    out = quantized_fm_forward(user_ids, course_ids, user_table, course_table, w, b)
    out = jax.block_until_ready(out)

    ref = reference_forward(user_ids, course_ids, user_table, course_table, w, b)
    assert out.shape == (batch, 1)
    assert jnp.allclose(out, ref, atol=1e-4, rtol=1e-4)

    print("KERNEL_OK")
</pallas_src>

<mosaic_0001>
module attributes {stable_mosaic.version = 11 : i64} {
  func.func @_fm_kernel(%arg0: i32, %arg1: memref<1x128xi32, #tpu.memory_space<vmem>>, %arg2: memref<1x128xi32, #tpu.memory_space<vmem>>, %arg3: memref<32x64xf32, #tpu.memory_space<vmem>>, %arg4: memref<32x32xf32, #tpu.memory_space<vmem>>, %arg5: memref<1x32xf32, #tpu.memory_space<vmem>>, %arg6: memref<1x32xf32, #tpu.memory_space<vmem>>, %arg7: memref<1xf32, #tpu.memory_space<smem>>, %arg8: memref<1x128xf32, #tpu.memory_space<vmem>>) attributes {dimension_semantics = [#tpu.dimension_semantics<parallel>], iteration_bounds = array<i64: 1>, scalar_prefetch = 0 : i64, scratch_operands = 0 : i64, tpu.core_type = #tpu.core_type<tc>, window_params = [{transform_indices = @transform_0, window_bounds = array<i64: 1, 128>}, {transform_indices = @transform_1, window_bounds = array<i64: 1, 128>}, {pipeline_mode = #tpu.pipeline_mode<synchronous>, transform_indices = @transform_2, window_bounds = array<i64: 32, 64>}, {pipeline_mode = #tpu.pipeline_mode<synchronous>, transform_indices = @transform_3, window_bounds = array<i64: 32, 32>}, {pipeline_mode = #tpu.pipeline_mode<synchronous>, transform_indices = @transform_4, window_bounds = array<i64: 1, 32>}, {pipeline_mode = #tpu.pipeline_mode<synchronous>, transform_indices = @transform_5, window_bounds = array<i64: 1, 32>}, {transform_indices = @transform_6, window_bounds = array<i64: 1>}, {transform_indices = @transform_7, window_bounds = array<i64: 1, 128>}]} {
    %c0 = arith.constant 0 : index
    %c0_0 = arith.constant 0 : index
    %0 = vector.load %arg1[%c0, %c0_0] : memref<1x128xi32, #tpu.memory_space<vmem>>, vector<1x128xi32>
    %c0_1 = arith.constant 0 : index
    %c0_2 = arith.constant 0 : index
    %1 = vector.load %arg2[%c0_1, %c0_2] : memref<1x128xi32, #tpu.memory_space<vmem>>, vector<1x128xi32>
    %2 = tpu.iota {dimensions = array<i32: 0>} : vector<64x128xi32>
    %3 = vector.broadcast %0 : vector<1x128xi32> to vector<64x128xi32>
    %4 = arith.cmpi eq, %2, %3 : vector<64x128xi32>
    %5 = arith.extui %4 : vector<64x128xi1> to vector<64x128xi32>
    %6 = arith.sitofp %5 : vector<64x128xi32> to vector<64x128xf32>
    %7 = tpu.iota {dimensions = array<i32: 0>} : vector<32x128xi32>
    %8 = vector.broadcast %1 : vector<1x128xi32> to vector<32x128xi32>
    %9 = arith.cmpi eq, %7, %8 : vector<32x128xi32>
    %10 = arith.extui %9 : vector<32x128xi1> to vector<32x128xi32>
    %11 = arith.sitofp %10 : vector<32x128xi32> to vector<32x128xf32>
    %c0_3 = arith.constant 0 : index
    %c0_4 = arith.constant 0 : index
    %12 = vector.load %arg3[%c0_3, %c0_4] : memref<32x64xf32, #tpu.memory_space<vmem>>, vector<32x64xf32>
    %cst = arith.constant dense<0.000000e+00> : vector<32x128xf32>
    %13 = tpu.matmul %12, %6, %cst {dimension_numbers = #tpu.dot_dimension_numbers<[1], [0], [0], [1], [0, 0, 1, 1], [], []>} : vector<32x64xf32>, vector<64x128xf32>, vector<32x128xf32> -> vector<32x128xf32>
    %c0_5 = arith.constant 0 : index
    %c0_6 = arith.constant 0 : index
    %14 = vector.load %arg4[%c0_5, %c0_6] : memref<32x32xf32, #tpu.memory_space<vmem>>, vector<32x32xf32>
    %cst_7 = arith.constant dense<0.000000e+00> : vector<32x128xf32>
    %15 = tpu.matmul %14, %11, %cst_7 {dimension_numbers = #tpu.dot_dimension_numbers<[1], [0], [0], [1], [0, 0, 1, 1], [], []>} : vector<32x32xf32>, vector<32x128xf32>, vector<32x128xf32> -> vector<32x128xf32>
    %c0_8 = arith.constant 0 : index
    %c0_9 = arith.constant 0 : index
    %16 = vector.load %arg5[%c0_8, %c0_9] : memref<1x32xf32, #tpu.memory_space<vmem>>, vector<1x32xf32>
    %cst_10 = arith.constant dense<0.000000e+00> : vector<1x128xf32>
    %17 = tpu.matmul %16, %13, %cst_10 {dimension_numbers = #tpu.dot_dimension_numbers<[1], [0], [0], [1], [0, 0, 1, 1], [], []>} : vector<1x32xf32>, vector<32x128xf32>, vector<1x128xf32> -> vector<1x128xf32>
    %c0_11 = arith.constant 0 : index
    %c0_12 = arith.constant 0 : index
    %18 = vector.load %arg6[%c0_11, %c0_12] : memref<1x32xf32, #tpu.memory_space<vmem>>, vector<1x32xf32>
    %cst_13 = arith.constant dense<0.000000e+00> : vector<1x128xf32>
    %19 = tpu.matmul %18, %15, %cst_13 {dimension_numbers = #tpu.dot_dimension_numbers<[1], [0], [0], [1], [0, 0, 1, 1], [], []>} : vector<1x32xf32>, vector<32x128xf32>, vector<1x128xf32> -> vector<1x128xf32>
    %20 = arith.addf %17, %19 : vector<1x128xf32>
    %c0_14 = arith.constant 0 : index
    %21 = memref.load %arg7[%c0_14] : memref<1xf32, #tpu.memory_space<smem>>
    %22 = vector.broadcast %21 : f32 to vector<1x128xf32>
    %23 = arith.addf %20, %22 : vector<1x128xf32>
    %c0_15 = arith.constant 0 : index
    %c0_16 = arith.constant 0 : index
    %24 = vector.load %arg8[%c0_15, %c0_16] : memref<1x128xf32, #tpu.memory_space<vmem>>, vector<1x128xf32>
    tpu.vector_store %arg8[%c0_15, %c0_16], %23 {strides = array<i32>} : memref<1x128xf32, #tpu.memory_space<vmem>>, vector<1x128xf32>,
    return
  }
  func.func @transform_0(%arg0: i32) -> (i32, i32) {
    %c0_i32 = arith.constant 0 : i32
    %c0_i32_0 = arith.constant 0 : i32
    return %arg0, %c0_i32 : i32, i32
  }
  func.func @transform_1(%arg0: i32) -> (i32, i32) {
    %c0_i32 = arith.constant 0 : i32
    %c0_i32_0 = arith.constant 0 : i32
    return %arg0, %c0_i32 : i32, i32
  }
  func.func @transform_2(%arg0: i32) -> (i32, i32) {
    %c0_i32 = arith.constant 0 : i32
    %c0_i32_0 = arith.constant 0 : i32
    %c0_i32_1 = arith.constant 0 : i32
    return %c0_i32, %c0_i32_0 : i32, i32
  }
  func.func @transform_3(%arg0: i32) -> (i32, i32) {
    %c0_i32 = arith.constant 0 : i32
    %c0_i32_0 = arith.constant 0 : i32
    %c0_i32_1 = arith.constant 0 : i32
    return %c0_i32, %c0_i32_0 : i32, i32
  }
  func.func @transform_4(%arg0: i32) -> (i32, i32) {
    %c0_i32 = arith.constant 0 : i32
    %c0_i32_0 = arith.constant 0 : i32
    %c0_i32_1 = arith.constant 0 : i32
    return %c0_i32, %c0_i32_0 : i32, i32
  }
  func.func @transform_5(%arg0: i32) -> (i32, i32) {
    %c0_i32 = arith.constant 0 : i32
    %c0_i32_0 = arith.constant 0 : i32
    %c0_i32_1 = arith.constant 0 : i32
    return %c0_i32, %c0_i32_0 : i32, i32
  }
  func.func @transform_6(%arg0: i32) -> i32 {
    %c0_i32 = arith.constant 0 : i32
    %c0_i32_0 = arith.constant 0 : i32
    return %c0_i32 : i32
  }
  func.func @transform_7(%arg0: i32) -> (i32, i32) {
    %c0_i32 = arith.constant 0 : i32
    %c0_i32_0 = arith.constant 0 : i32
    return %arg0, %c0_i32 : i32, i32
  }
}

</mosaic_0001>

<bundles_post_ra>
// kernel: tpu_custom_call.1
= control target key start
LH: loop header
LB: loop body
LE: loop exit
PB: predicated region body
PF: predicated region fallthrough
CT: control target
= control target key end

     0   :  { %13 = vsyncpa [#allocation4], 0  ;;  %s763_s0 = inlined_call_operand.vmem [shape: s32[1,128], index: 0, kind: input, shape index: {}]   ;;  %s764_s1 = inlined_call_operand.vmem [shape: s32[1,128], index: 1, kind: input, shape index: {}]   ;;  %s765_s2 = inlined_call_operand.hbm [shape: f32[32,64], index: 2, kind: input, shape index: {}]   ;;  %s766_s3 = inlined_call_operand.hbm [shape: f32[32,32], index: 3, kind: input, shape index: {}]   ;;  %s767_s4 = inlined_call_operand.vmem [shape: f32[1,32], index: 4, kind: input, shape index: {}]   ;;  %s768_s5 = inlined_call_operand.vmem [shape: f32[1,32], index: 5, kind: input, shape index: {}]   ;;  %s769_s6 = inlined_call_operand.<no memory space> [shape: f32[1], index: 6, kind: input, shape index: {}]   ;;  %s770_s7 = inlined_call_operand.hbm [shape: f32[1,128], index: 7, kind: output, shape index: {}]  }
   0x1   :  { %14 = vsyncpa [#allocation7], 0 }
   0x2   :  { %15 = vsyncpa [#allocation5], 0  ;;  %s681_s24 = smov [#allocation3]  }
   0x3   :  { %s25_s25 = sshll.u32 %s681_s24, 4  ;;  %s26_s25 = int_to_ptr.vmem [resolvable:$true] %s25_s25 }
   0x4   :  { %s623_s26 = scalar_lea.vmem %s26_s25, 512  ;;  %p628_p1 = scmp.lt.s32.totalorder %s26_s25, %s26_s25 }
   0x5   :  { %p624_p0 = scmp.ne.s32.totalorder %s26_s25, %s623_s26  ;;  %p629_p2 = scmp.lt.s32.totalorder %s623_s26, %s623_s26 }
   0x7   :  { %p630_p3 = por %p629_p2, %p628_p1 }
   0x9   :  { %p631_p4 = pnand %p630_p3, %p624_p0 }
   0xb   :  { %634 = shalt.err (!%p631_p4)
}
   0xc   :  { %s682_s27 = smov 128   ;;  %s683_s28 = smov 8  }
   0xd   :  { %31 = dma.hbm_to_vmem [thread:$0]  %s765_s2, 512, %s26_s25, [#allocation4], %s682_s27, %s682_s27, %s683_s28  }
   0xe   :  { %s684_s8 = smov [#allocation6]  }
   0xf   :  { %s37_s9 = sshll.u32 %s684_s8, 4  ;;  %s38_s9 = int_to_ptr.vmem [resolvable:$true] %s37_s9 }
  0x10   :  { %s643_s10 = scalar_lea.vmem %s38_s9, 512  ;;  %p648_p6 = scmp.lt.s32.totalorder %s38_s9, %s38_s9 }
  0x11   :  { %p644_p5 = scmp.ne.s32.totalorder %s38_s9, %s643_s10  ;;  %p649_p7 = scmp.lt.s32.totalorder %s643_s10, %s643_s10 }
  0x13   :  { %p650_p8 = por %p649_p7, %p648_p6 }
  0x15   :  { %p651_p9 = pnand %p650_p8, %p644_p5 }
  0x17   :  { %654 = shalt.err (!%p651_p9)
}
  0x18   :  { %43 = dma.hbm_to_vmem [thread:$0]  %s766_s3, 512, %s38_s9, [#allocation7], %s682_s27, %s682_s27, %s683_s28  }
  0x19   :  { %675 = dma.done.wait [#allocation4], 512  }
  0x1a   :  { %676 = vsyncadd [#allocation4], 4294966784 }
  0x1b   :  { %677 = dma.done.wait [#allocation7], 512  }
  0x1c   :  { %678 = vsyncadd [#allocation7], 4294966784  ;;  %v58_v0 = vlaneseq  ;;  %vm217_vm0 = vcmask 261120   ;;  %v483_v8 = vld [vmem:[%s763_s0] ss:$0 sm:$0xff]  ;;  %v685_v12 = vmov 1.0   ;;  %v464_v34 = vstv %s769_s6 }
  0x1d   :  { %v492_v9 = vld [vmem:[%s764_s1] ss:$0 sm:$0xff]  ;;  %v214_v13 = vld [vmem:[#allocation6 + $0x8] sm:$0xff]  ;;  %v215_v14 = vld [vmem:[#allocation6 + $0x10] sm:$0xff]  ;;  %vm115_vm11 = vcmask 523264   ;;  %v686_v20 = vmov 0.0  }
  0x1e   :  { %v59_v1 = vshrl.u32 %v58_v0, 7  ;;  %v213_v11 = vld [vmem:[#allocation6] sm:$0xff]  ;;  %v216_v16 = vld [vmem:[#allocation6 + $0x18] sm:$0xff]  ;;  %v112_v17 = vld [vmem:[#allocation3 + $0x8] sm:$0xff]  ;;  %vm687_vm14 = vmmov 0   ;;  %s688_s18 = smov [#allocation8]  }
  0x1f   :  { %579 = vmatprep.mubr.msk.f32.mxu1 %vm217_vm0, %v213_v11  ;;  %v111_v15 = vld [vmem:[#allocation3] sm:$0xff]  ;;  %v113_v18 = vld [vmem:[#allocation3 + $0x10] sm:$0xff]  ;;  %v114_v19 = vld [vmem:[#allocation3 + $0x18] sm:$0xff]  ;;  %s473_s19 = sshll.u32 %s688_s18, 4  ;;  %s474_s19 = int_to_ptr.vmem [resolvable:$true] %s473_s19 }
  0x20   :  { %v66_v2 = vadd.s32 56, %v59_v1  ;;  %v62_v3 = vadd.s32 24, %v59_v1  ;;  %v65_v4 = vadd.s32 48, %v59_v1  ;;  %v61_v5 = vadd.s32 16, %v59_v1  ;;  %565 = vmatprep.mubr.msk.f32.mxu0 %vm115_vm11, %v111_v15  ;;  %v316_v26 = vld [vmem:[%s768_s5] sm:$0x1]  ;;  %p660_p11 = scmp.lt.s32.totalorder %s474_s19, %s474_s19 }
  0x21   :  { %v64_v6 = vadd.s32 40, %v59_v1  ;;  %v60_v7 = vadd.s32 8, %v59_v1  ;;  %v63_v10 = vadd.s32 32, %v59_v1  ;;  %vm99_vm8 = vcmp.eq.s32.totalorder %v59_v1, %v492_v9  ;;  %v315_v30 = vld [vmem:[%s767_s4] sm:$0x1]  ;;  %s655_s20 = scalar_lea.vmem %s474_s19, 16 }
  0x22   :  { %vm78_vm1 = vcmp.eq.s32.totalorder %v66_v2, %v483_v8  ;;  %vm102_vm2 = vcmp.eq.s32.totalorder %v62_v3, %v492_v9  ;;  %vm77_vm3 = vcmp.eq.s32.totalorder %v65_v4, %v483_v8  ;;  %vm101_vm4 = vcmp.eq.s32.totalorder %v61_v5, %v492_v9  ;;  %p656_p10 = scmp.ne.s32.totalorder %s474_s19, %s655_s20  ;;  %s659_s4 = scalar_lea.vmem %s474_s19, 32 }
  0x23   :  { %549 = vmatprep.subr.msk.mxu0 %vm78_vm1, %v685_v12  ;;  %571 = vmatprep.subr.msk.mxu1 %vm102_vm2, %v685_v12  ;;  %vm76_vm5 = vcmp.eq.s32.totalorder %v64_v6, %v483_v8  ;;  %vm100_vm6 = vcmp.eq.s32.totalorder %v60_v7, %v492_v9  ;;  %vm75_vm7 = vcmp.eq.s32.totalorder %v63_v10, %v483_v8  ;;  %p661_p12 = scmp.lt.s32.totalorder %s659_s4, %s655_s20 }
  0x24   :  { %550 = vmatpush3.msk.msra.mxu0 %vm78_vm1, %v685_v12  ;;  %572 = vmatpush3.msk.msra.mxu1 %vm102_vm2, %v685_v12  ;;  %vm74_vm9 = vcmp.eq.s32.totalorder %v62_v3, %v483_v8  ;;  %vm73_vm10 = vcmp.eq.s32.totalorder %v61_v5, %v483_v8  ;;  %vm72_vm12 = vcmp.eq.s32.totalorder %v60_v7, %v483_v8 }
  0x25   :  { %551 = vmatprep.subr.msk.mxu0 %vm77_vm3, %v685_v12  ;;  %573 = vmatprep.subr.msk.mxu1 %vm101_vm4, %v685_v12  ;;  %vm71_vm13 = vcmp.eq.s32.totalorder %v59_v1, %v483_v8  ;;  %p662_p13 = por %p661_p12, %p660_p11 }
  0x26   :  { %552 = vmatpush3.msk.msra.mxu0 %vm77_vm3, %v685_v12  ;;  %574 = vmatpush3.msk.msra.mxu1 %vm101_vm4, %v685_v12 }
  0x27   :  { %553 = vmatprep.subr.msk.mxu0 %vm76_vm5, %v685_v12  ;;  %575 = vmatprep.subr.msk.mxu1 %vm100_vm6, %v685_v12  ;;  %p663_p0 = pnand %p662_p13, %p656_p10 }
  0x28   :  { %554 = vmatpush3.msk.msra.mxu0 %vm76_vm5, %v685_v12  ;;  %576 = vmatpush3.msk.msra.mxu1 %vm100_vm6, %v685_v12 }
  0x29   :  { %555 = vmatprep.subr.msk.mxu0 %vm75_vm7, %v685_v12  ;;  %577 = vmatprep.subr.msk.mxu1 %vm99_vm8, %v685_v12 }
  0x2a   :  { %556 = vmatpush3.msk.msra.mxu0 %vm75_vm7, %v685_v12  ;;  %578 = vmatpush3.msk.msra.mxu1 %vm99_vm8, %v685_v12 }
  0x2b   :  { %557 = vmatprep.subr.msk.mxu0 %vm74_vm9, %v685_v12  ;;  %580 = vmatmul.mubr.msk.f32.vlgmr.msra.gmra.mxu1 %vm217_vm0, %v214_v13 }
  0x2c   :  { %558 = vmatpush3.msk.msra.mxu0 %vm74_vm9, %v685_v12  ;;  %582 = vmatprep.mubr.msk.f32.mxu1 %vm217_vm0, %v215_v14 }
  0x2d   :  { %559 = vmatprep.subr.msk.mxu0 %vm73_vm10, %v685_v12  ;;  %585 = vmatprep.subr.mxu1 %v686_v20 }
  0x2e   :  { %560 = vmatpush3.msk.msra.mxu0 %vm73_vm10, %v685_v12 }
  0x2f   :  { %561 = vmatprep.subr.msk.mxu0 %vm72_vm12, %v685_v12  ;;  %583 = vmatmul.mubr.msk.f32.gmra.mxu1 %vm217_vm0, %v216_v16 }
  0x30   :  { %562 = vmatpush3.msk.msra.mxu0 %vm72_vm12, %v685_v12  ;;  %593 = vmatprep.mubr.msk.f32.mxu1 %vm687_vm14, %v686_v20 }
  0x31   :  { %563 = vmatprep.subr.msk.mxu0 %vm71_vm13, %v685_v12 }
  0x32   :  { %564 = vmatpush3.msk.msra.mxu0 %vm71_vm13, %v685_v12 }
  0x33   :  { %566 = vmatmul.mubr.msk.f32.vlgmr.msra.gmra.mxu0 %vm115_vm11, %v112_v17  ;;  %596 = vmatprep.subr.mxu0 %v686_v20 }
  0x34   :  { %568 = vmatprep.mubr.msk.f32.mxu0 %vm115_vm11, %v113_v18 }
  0x37   :  { %569 = vmatmul.mubr.msk.f32.gmra.mxu0 %vm115_vm11, %v114_v19 }
  0x38   :  { %604 = vmatprep.mubr.msk.f32.mxu0 %vm687_vm14, %v686_v20 }
  0xeb   :  { %v581_v21 = vpop.f32.mrf.mxu1 }
  0xed   :  { %v296_v22 = vpop.f32.mrf.mxu1 }
  0xef   :  { %v584_v23 = vpop.f32.mrf.mxu1 }
  0xf0   :  { %586 = vmatpush3.msra.mxu1 %v584_v23 }
  0xf1   :  { %v306_v24 = vpop.f32.mrf.mxu1  ;;  %587 = vmatprep.subr.mxu1 %v686_v20 }
  0xf2   :  { %588 = vmatpush3.msra.mxu1 %v306_v24 }
  0xf3   :  { %v567_v25 = vpop.f32.mrf.mxu0  ;;  %589 = vmatprep.subr.mxu1 %v686_v20 }
  0xf4   :  { %590 = vmatpush3.msra.mxu1 %v581_v21 }
  0xf5   :  { %v194_v27 = vpop.f32.mrf.mxu0  ;;  %591 = vmatprep.subr.mxu1 %v686_v20 }
  0xf6   :  { %592 = vmatpush3.msra.mxu1 %v296_v22 }
  0xf7   :  { %v570_v28 = vpop.f32.mrf.mxu0  ;;  %594 = vmatmul.mubr.msk.f32.vlgmr.msra.gmra.mxu1 %vm217_vm0, %v316_v26 }
  0xf8   :  { %597 = vmatpush3.msra.mxu0 %v570_v28 }
  0xf9   :  { %v204_v29 = vpop.f32.mrf.mxu0  ;;  %598 = vmatprep.subr.mxu0 %v686_v20 }
  0xfa   :  { %599 = vmatpush3.msra.mxu0 %v204_v29 }
  0xfb   :  { %600 = vmatprep.subr.mxu0 %v686_v20 }
  0xfc   :  { %601 = vmatpush3.msra.mxu0 %v567_v25 }
  0xfd   :  { %602 = vmatprep.subr.mxu0 %v686_v20 }
  0xfe   :  { %603 = vmatpush3.msra.mxu0 %v194_v27 }
  0xff   :  { %605 = vmatmul.mubr.msk.f32.vlgmr.msra.gmra.mxu0 %vm217_vm0, %v315_v30 }
 0x1b7   :  { %v386_v31 = vpop.f32.mrf.mxu1 }
 0x1b9   :  { %v595_v32 = vpop.f32.mrf.mxu1 }
 0x1bf   :  { %v459_v33 = vpop.f32.mrf.mxu0 }
 0x1c0   :  { %v460_v35 = vadd.f32 %v459_v33, %v386_v31 }
 0x1c1   :  { %v606_v36 = vpop.f32.mrf.mxu0 }
 0x1c2   :  { %v465_v37 = vadd.f32 %v464_v34, %v460_v35 }
 0x1c4   :  { %466 = vst [vmem:[#allocation8] sm:$0x1] %v465_v37 }
 0x1c5   :  { %666 = shalt.err (!%p663_p0)
}
 0x1c6   :  { %476 = dma.vmem_to_hbm [thread:$0]  %s474_s19, 16, %s770_s7, [#allocation5]  }
 0x1c7   :  { %679 = dma.done.wait [#allocation5], 16  }
 0x1c8   :  { %680 = vsyncadd [#allocation5], 4294967280 }
 0x1c9   :  { %480 = vsyncpa [#allocation4], 1 }
 0x1ca   :  { %481 = vsyncpa [#allocation7], 1 }
 0x1cb   :  { %482 = vsyncpa [#allocation5], 1 }

</bundles_post_ra>
